<compile_context>
chip_gen: v7x
topology: tpu7x:2x2x1
jax: 0.10.0
libtpu: 0.0.40
codegen_flags: <defaults>
</compile_context>

<pallas_src>
import functools

import jax
import jax.numpy as jnp
import numpy as np
from jax import lax
from jax.experimental import pallas as pl
from jax.experimental.pallas import tpu as pltpu


def _round_up(x, m):
    return ((x + m - 1) // m) * m


# ---------------------------------------------------------------------------
# Pallas kernel: whole TemporalBlock for B_TILE batch elements per grid step.
# ---------------------------------------------------------------------------
def _temporal_block_kernel(*refs, L, Lr, K, dilation, padding, has_downsample):
    if has_downsample:
        (x_ref, w1_ref, b1_ref, w2_ref, b2_ref, wd_ref, bd_ref,
         out_ref, im1_ref, im2_ref) = refs
    else:
        (x_ref, w1_ref, b1_ref, w2_ref, b2_ref,
         out_ref, im1_ref, im2_ref) = refs
        wd_ref = bd_ref = None

    B = out_ref.shape[0]          # batch elements folded into this grid step
    Cinp = x_ref.shape[2]
    Coutp = out_ref.shape[2]
    p, d = padding, dilation

    def scatter_im2col(im_ref, b, src, cp):
        """Scatter-style im2col: write the valid window of `src` ((L, cp) f32,
        batch b's conv input) into tap k's lane block at its shifted row
        offset; zero the (static, tiny) out-of-range margins."""
        r0 = b * Lr
        for k in range(K):
            c0 = k * cp
            t0 = max(0, p - k * d)              # first output row with tap in range
            t1 = min(Lr, L + p - k * d)         # one past the last such row
            if t1 <= t0:                        # tap never in range (tiny L)
                im_ref[r0:r0 + Lr, c0:c0 + cp] = jnp.zeros((Lr, cp), jnp.float32)
                continue
            if t0 > 0:
                im_ref[r0:r0 + t0, c0:c0 + cp] = jnp.zeros((t0, cp), jnp.float32)
            if t1 < Lr:
                im_ref[r0 + t1:r0 + Lr, c0:c0 + cp] = (
                    jnp.zeros((Lr - t1, cp), jnp.float32))
            s0 = t0 + k * d - p                 # matching first source row
            im_ref[r0 + t0:r0 + t1, c0:c0 + cp] = src[s0:s0 + (t1 - t0), :]

    # ---- conv1: build im2col slab, one deep-contraction MXU matmul (bf16 in,
    #      f32 acc), bias + ReLU in f32.
    for b in range(B):
        scatter_im2col(im1_ref, b, x_ref[b], Cinp)
    acc1 = jnp.dot(im1_ref[...].astype(jnp.bfloat16), w1_ref[...],
                   preferred_element_type=jnp.float32)     # (B*Lr, Coutp)
    h1 = jnp.maximum(acc1 + b1_ref[...], 0.0)              # dropout1 = identity (eval)

    # ---- conv2: same treatment, sourcing the valid rows of h1 per batch elem.
    for b in range(B):
        scatter_im2col(im2_ref, b, h1[b * Lr:b * Lr + L, :], Coutp)
    acc2 = jnp.dot(im2_ref[...].astype(jnp.bfloat16), w2_ref[...],
                   preferred_element_type=jnp.float32)     # (B*Lr, Coutp)
    h2 = jnp.maximum(acc2 + b2_ref[...], 0.0)              # dropout2 = identity (eval)

    # ---- residual path
    if has_downsample:
        if K % 2 == 1:
            # centre tap of the conv1 slab is exactly x (k*d == padding).
            kmid = (K - 1) // 2
            xds = im1_ref[:, kmid * Cinp:(kmid + 1) * Cinp]
            res_full = (jnp.dot(xds.astype(jnp.bfloat16), wd_ref[...],
                                preferred_element_type=jnp.float32)
                        + bd_ref[...])
            res_rows = [res_full[b * Lr:b * Lr + L, :] for b in range(B)]
        else:
            res_rows = [jnp.dot(x_ref[b].astype(jnp.bfloat16), wd_ref[...],
                                preferred_element_type=jnp.float32) + bd_ref[...]
                        for b in range(B)]
    else:
        res_rows = [x_ref[b] for b in range(B)]            # identity skip, exact f32

    for b in range(B):
        out_ref[b] = jnp.maximum(h2[b * Lr:b * Lr + L, :] + res_rows[b], 0.0)


# ---------------------------------------------------------------------------
# Wrapper: layout plumbing (lane padding, im2col weight slabs, batch tiling).
# ---------------------------------------------------------------------------
def temporal_block(x, w1, b1, w2, b2, wd, bd, *,
                   kernel_size, stride, dilation, padding):
    """x: (N, Cin, L) f32 (PyTorch NCL).
       w1: (Cout, Cin, K), w2: (Cout, Cout, K), wd: (Cout, Cin, 1) or None (OIW).
       b1/b2/bd: (Cout,)."""
    assert stride == 1, "TemporalBlock residual add requires stride == 1"
    N, Cin, L = x.shape
    Cout = w1.shape[0]
    K = kernel_size
    # no Chomp1d in this module: residual add requires matching lengths
    assert 2 * padding == dilation * (K - 1)

    has_downsample = wd is not None
    Cinp = _round_up(Cin, 128)
    Coutp = _round_up(Cout, 128)
    Lr = _round_up(L, 16)            # aligned row block per batch element

    # ---- pick batch tile: fill the MXU M dimension, stay within a VMEM budget.
    def vmem_bytes(bt):
        blocks = 2 * bt * L * (Cinp + Coutp) * 4                      # x/out (dbl-buf)
        weights = 2 * 2 * (K * Cinp * Coutp + K * Coutp * Coutp
                           + (Cinp * Coutp if has_downsample else 0))  # bf16, dbl-buf
        scratch = bt * Lr * K * (Cinp + Coutp) * 4                    # f32 im slabs
        temps = (bt * Lr * K * (Cinp + Coutp) * 2                     # bf16 cast slabs
                 + 3 * bt * Lr * Coutp * 4)                           # h1/h2/res f32
        return blocks + weights + scratch + temps

    B_TILE = max(1, min(N, 8, max(1, 512 // Lr)))
    B_TILE = min(B_TILE, max(1, 32 // K))        # bound generated store count
    while B_TILE > 1 and vmem_bytes(B_TILE) > 24 * 1024 * 1024:
        B_TILE -= 1
    Npad = _round_up(N, B_TILE)

    # im2col weight slabs: (Cout, cin, K) -> (K*cinp, Coutp), bf16, lane-padded.
    def pack_conv_w(w_oiw, cin, cinp):
        w = jnp.transpose(w_oiw, (2, 1, 0))                           # (K, cin, Cout)
        w = jnp.pad(w, ((0, 0), (0, cinp - cin), (0, Coutp - Cout)))
        return w.reshape(K * cinp, Coutp).astype(jnp.bfloat16)

    w1_p = pack_conv_w(w1, Cin, Cinp)
    w2_p = pack_conv_w(w2, Cout, Coutp)
    b1_p = jnp.pad(b1, (0, Coutp - Cout)).reshape(1, Coutp).astype(jnp.float32)
    b2_p = jnp.pad(b2, (0, Coutp - Cout)).reshape(1, Coutp).astype(jnp.float32)

    # Input: NCL -> NLC, lane-pad channels, batch-pad to a multiple of B_TILE.
    # Kept f32 so the identity skip path is exact; bf16 cast happens in-kernel
    # only at the MXU matmul inputs.
    x_nlc = jnp.transpose(x, (0, 2, 1)).astype(jnp.float32)
    x_p = jnp.pad(x_nlc, ((0, Npad - N), (0, 0), (0, Cinp - Cin)))

    args = [x_p, w1_p, b1_p, w2_p, b2_p]
    in_specs = [
        pl.BlockSpec((B_TILE, L, Cinp), lambda n: (n, 0, 0)),          # x
        pl.BlockSpec((K * Cinp, Coutp), lambda n: (0, 0)),             # w1 slab
        pl.BlockSpec((1, Coutp), lambda n: (0, 0)),                    # b1
        pl.BlockSpec((K * Coutp, Coutp), lambda n: (0, 0)),            # w2 slab
        pl.BlockSpec((1, Coutp), lambda n: (0, 0)),                    # b2
    ]
    if has_downsample:
        wd_p = jnp.pad(wd[:, :, 0].T,
                       ((0, Cinp - Cin), (0, Coutp - Cout))).astype(jnp.bfloat16)
        bd_p = jnp.pad(bd, (0, Coutp - Cout)).reshape(1, Coutp).astype(jnp.float32)
        args += [wd_p, bd_p]
        in_specs += [pl.BlockSpec((Cinp, Coutp), lambda n: (0, 0)),    # wd (1x1)
                     pl.BlockSpec((1, Coutp), lambda n: (0, 0))]       # bd

    kernel = functools.partial(_temporal_block_kernel, L=L, Lr=Lr, K=K,
                               dilation=dilation, padding=padding,
                               has_downsample=has_downsample)

    # Advisory cost estimate for the XLA scheduler.
    flops = 2 * N * L * (K * Cin * Cout + K * Cout * Cout)
    if has_downsample:
        flops += 2 * N * L * Cin * Cout
    bytes_accessed = (x_p.size * 4 + w1_p.size * 2 + w2_p.size * 2
                      + (Cinp * Coutp * 2 if has_downsample else 0)
                      + Npad * L * Coutp * 4)

    vmem_limit = int(min(64 * 1024 * 1024,
                         max(32 * 1024 * 1024, 2 * vmem_bytes(B_TILE))))

    out = pl.pallas_call(
        kernel,
        out_shape=jax.ShapeDtypeStruct((Npad, L, Coutp), jnp.float32),
        grid_spec=pltpu.PrefetchScalarGridSpec(
            num_scalar_prefetch=0,
            grid=(Npad // B_TILE,),
            in_specs=in_specs,
            out_specs=pl.BlockSpec((B_TILE, L, Coutp), lambda n: (n, 0, 0)),
            scratch_shapes=[pltpu.VMEM((B_TILE * Lr, K * Cinp), jnp.float32),
                            pltpu.VMEM((B_TILE * Lr, K * Coutp), jnp.float32)],
        ),
        compiler_params=pltpu.CompilerParams(
            dimension_semantics=("parallel",),
            vmem_limit_bytes=vmem_limit),
        cost_estimate=pl.CostEstimate(flops=flops, transcendentals=0,
                                      bytes_accessed=bytes_accessed),
    )(*args)

    out = out[:N, :, :Cout]                       # drop batch + lane padding
    return jnp.transpose(out, (0, 2, 1))          # back to (N, Cout, L)


# ---------------------------------------------------------------------------
# Deterministic parameter construction mirroring TemporalBlock.__init__.
# ---------------------------------------------------------------------------
def init_params(key, n_inputs, n_outputs, kernel_size):
    ks = jax.random.split(key, 6)

    def wnorm_conv_weight(k, cout, cin, ksize):
        # weight_norm resolved: w = g * v / ||v|| with g = ||v||  ->  w = v
        v = 0.01 * jax.random.normal(k, (cout, cin, ksize), jnp.float32)
        norm = jnp.sqrt(jnp.sum(v * v, axis=(1, 2), keepdims=True))
        return norm * v / norm

    def conv_bias(k, cout, fan_in):
        bound = 1.0 / np.sqrt(fan_in)
        return jax.random.uniform(k, (cout,), jnp.float32, -bound, bound)

    w1 = wnorm_conv_weight(ks[0], n_outputs, n_inputs, kernel_size)
    b1 = conv_bias(ks[1], n_outputs, n_inputs * kernel_size)
    w2 = wnorm_conv_weight(ks[2], n_outputs, n_outputs, kernel_size)
    b2 = conv_bias(ks[3], n_outputs, n_outputs * kernel_size)

    if n_inputs != n_outputs:
        wd = 0.01 * jax.random.normal(ks[4], (n_outputs, n_inputs, 1), jnp.float32)
        bd = conv_bias(ks[5], n_outputs, n_inputs)
    else:
        wd, bd = None, None        # downsample is None -> identity residual
    return w1, b1, w2, b2, wd, bd


# ---------------------------------------------------------------------------
# Pure-JAX reference (lax.conv_general_dilated) for correctness checking.
# ---------------------------------------------------------------------------
def reference_forward(x, w1, b1, w2, b2, wd, bd, *, dilation, padding):
    dn = ("NCH", "OIH", "NCH")

    def conv(inp, w, b, dil, pad):
        y = lax.conv_general_dilated(inp, w, window_strides=(1,),
                                     padding=((pad, pad),),
                                     rhs_dilation=(dil,),
                                     dimension_numbers=dn)
        return y + b[None, :, None]

    h1 = jnp.maximum(conv(x, w1, b1, dilation, padding), 0.0)
    h2 = jnp.maximum(conv(h1, w2, b2, dilation, padding), 0.0)
    res = x if wd is None else conv(x, wd, bd, 1, 0)
    return jnp.maximum(h2 + res, 0.0)


if __name__ == "__main__":
    KSIZE, STRIDE, DILATION, PADDING = 3, 1, 2, 2   # 2*pad == dil*(K-1)
    N, L = 2, 16
    key = jax.random.PRNGKey(0)
    kx1, kp1, kx2, kp2 = jax.random.split(key, 4)

    # Case 1: Cin != Cout -> 1x1 downsample residual path
    CIN, COUT = 4, 8
    x = jax.random.normal(kx1, (N, CIN, L), jnp.float32)
    w1, b1, w2, b2, wd, bd = init_params(kp1, CIN, COUT, KSIZE)
    y = temporal_block(x, w1, b1, w2, b2, wd, bd,
                       kernel_size=KSIZE, stride=STRIDE,
                       dilation=DILATION, padding=PADDING)
    y = jax.block_until_ready(y)
    y_ref = reference_forward(x, w1, b1, w2, b2, wd, bd,
                              dilation=DILATION, padding=PADDING)
    np.testing.assert_allclose(np.asarray(y), np.asarray(y_ref),
                               rtol=2e-2, atol=1e-2)

    # Case 2: Cin == Cout -> identity residual (no downsample matmul in-kernel)
    CIN2 = COUT2 = 8
    x2 = jax.random.normal(kx2, (N, CIN2, L), jnp.float32)
    w1b, b1b, w2b, b2b, wdb, bdb = init_params(kp2, CIN2, COUT2, KSIZE)
    y2 = temporal_block(x2, w1b, b1b, w2b, b2b, wdb, bdb,
                        kernel_size=KSIZE, stride=STRIDE,
                        dilation=DILATION, padding=PADDING)
    y2 = jax.block_until_ready(y2)
    y2_ref = reference_forward(x2, w1b, b1b, w2b, b2b, wdb, bdb,
                               dilation=DILATION, padding=PADDING)
    np.testing.assert_allclose(np.asarray(y2), np.asarray(y2_ref),
                               rtol=2e-2, atol=1e-2)

    print("KERNEL_OK")
</pallas_src>

<mosaic_0001>
module attributes {stable_mosaic.version = 11 : i64} {
  func.func @_temporal_block_kernel(%arg0: i32, %arg1: memref<2x16x128xf32, #tpu.memory_space<vmem>>, %arg2: memref<384x128xbf16, #tpu.memory_space<vmem>>, %arg3: memref<1x128xf32, #tpu.memory_space<vmem>>, %arg4: memref<384x128xbf16, #tpu.memory_space<vmem>>, %arg5: memref<1x128xf32, #tpu.memory_space<vmem>>, %arg6: memref<128x128xbf16, #tpu.memory_space<vmem>>, %arg7: memref<1x128xf32, #tpu.memory_space<vmem>>, %arg8: memref<2x16x128xf32, #tpu.memory_space<vmem>>, %arg9: memref<32x384xf32, #tpu.memory_space<vmem>>, %arg10: memref<32x384xf32, #tpu.memory_space<vmem>>) attributes {dimension_semantics = [#tpu.dimension_semantics<parallel>], iteration_bounds = array<i64: 1>, scalar_prefetch = 0 : i64, scratch_operands = 2 : i64, tpu.core_type = #tpu.core_type<tc>, window_params = [{transform_indices = @transform_0, window_bounds = array<i64: 2, 16, 128>}, {pipeline_mode = #tpu.pipeline_mode<synchronous>, transform_indices = @transform_1, window_bounds = array<i64: 384, 128>}, {pipeline_mode = #tpu.pipeline_mode<synchronous>, transform_indices = @transform_2, window_bounds = array<i64: 1, 128>}, {pipeline_mode = #tpu.pipeline_mode<synchronous>, transform_indices = @transform_3, window_bounds = array<i64: 384, 128>}, {pipeline_mode = #tpu.pipeline_mode<synchronous>, transform_indices = @transform_4, window_bounds = array<i64: 1, 128>}, {pipeline_mode = #tpu.pipeline_mode<synchronous>, transform_indices = @transform_5, window_bounds = array<i64: 128, 128>}, {pipeline_mode = #tpu.pipeline_mode<synchronous>, transform_indices = @transform_6, window_bounds = array<i64: 1, 128>}, {transform_indices = @transform_7, window_bounds = array<i64: 2, 16, 128>}]} {
    %c0 = arith.constant 0 : index
    %c0_0 = arith.constant 0 : index
    %c0_1 = arith.constant 0 : index
    %0 = vector.load %arg1[%c0, %c0_0, %c0_1] : memref<2x16x128xf32, #tpu.memory_space<vmem>>, vector<1x16x128xf32>
    %1 = vector.shape_cast %0 : vector<1x16x128xf32> to vector<16x128xf32>
    %cst = arith.constant 0.000000e+00 : f32
    %2 = vector.broadcast %cst : f32 to vector<2x128xf32>
    %c0_2 = arith.constant 0 : index
    %c0_3 = arith.constant 0 : index
    %3 = vector.load %arg9[%c0_2, %c0_3] : memref<32x384xf32, #tpu.memory_space<vmem>>, vector<2x128xf32>
    tpu.vector_store %arg9[%c0_2, %c0_3], %2 {strides = array<i32>} : memref<32x384xf32, #tpu.memory_space<vmem>>, vector<2x128xf32>,
    %4 = vector.extract_strided_slice %1 {offsets = [0, 0], sizes = [14, 128], strides = [1, 1]} : vector<16x128xf32> to vector<14x128xf32>
    %c2 = arith.constant 2 : index
    %c0_4 = arith.constant 0 : index
    %5 = vector.load %arg9[%c2, %c0_4] : memref<32x384xf32, #tpu.memory_space<vmem>>, vector<14x128xf32>
    tpu.vector_store %arg9[%c2, %c0_4], %4 {strides = array<i32>} : memref<32x384xf32, #tpu.memory_space<vmem>>, vector<14x128xf32>,
    %c0_5 = arith.constant 0 : index
    %c128 = arith.constant 128 : index
    %6 = vector.load %arg9[%c0_5, %c128] : memref<32x384xf32, #tpu.memory_space<vmem>>, vector<16x128xf32>
    tpu.vector_store %arg9[%c0_5, %c128], %1 {strides = array<i32>} : memref<32x384xf32, #tpu.memory_space<vmem>>, vector<16x128xf32>,
    %cst_6 = arith.constant 0.000000e+00 : f32
    %7 = vector.broadcast %cst_6 : f32 to vector<2x128xf32>
    %c14 = arith.constant 14 : index
    %c256 = arith.constant 256 : index
    %8 = vector.load %arg9[%c14, %c256] : memref<32x384xf32, #tpu.memory_space<vmem>>, vector<2x128xf32>
    tpu.vector_store %arg9[%c14, %c256], %7 {strides = array<i32>} : memref<32x384xf32, #tpu.memory_space<vmem>>, vector<2x128xf32>,
    %9 = vector.extract_strided_slice %1 {offsets = [2, 0], sizes = [14, 128], strides = [1, 1]} : vector<16x128xf32> to vector<14x128xf32>
    %c0_7 = arith.constant 0 : index
    %c256_8 = arith.constant 256 : index
    %10 = vector.load %arg9[%c0_7, %c256_8] : memref<32x384xf32, #tpu.memory_space<vmem>>, vector<14x128xf32>
    tpu.vector_store %arg9[%c0_7, %c256_8], %9 {strides = array<i32>} : memref<32x384xf32, #tpu.memory_space<vmem>>, vector<14x128xf32>,
    %c1 = arith.constant 1 : index
    %c0_9 = arith.constant 0 : index
    %c0_10 = arith.constant 0 : index
    %11 = vector.load %arg1[%c1, %c0_9, %c0_10] : memref<2x16x128xf32, #tpu.memory_space<vmem>>, vector<1x16x128xf32>
    %12 = vector.shape_cast %11 : vector<1x16x128xf32> to vector<16x128xf32>
    %cst_11 = arith.constant 0.000000e+00 : f32
    %13 = vector.broadcast %cst_11 : f32 to vector<2x128xf32>
    %c16 = arith.constant 16 : index
    %c0_12 = arith.constant 0 : index
    %14 = vector.load %arg9[%c16, %c0_12] : memref<32x384xf32, #tpu.memory_space<vmem>>, vector<2x128xf32>
    tpu.vector_store %arg9[%c16, %c0_12], %13 {strides = array<i32>} : memref<32x384xf32, #tpu.memory_space<vmem>>, vector<2x128xf32>,
    %15 = vector.extract_strided_slice %12 {offsets = [0, 0], sizes = [14, 128], strides = [1, 1]} : vector<16x128xf32> to vector<14x128xf32>
    %c18 = arith.constant 18 : index
    %c0_13 = arith.constant 0 : index
    %16 = vector.load %arg9[%c18, %c0_13] : memref<32x384xf32, #tpu.memory_space<vmem>>, vector<14x128xf32>
    tpu.vector_store %arg9[%c18, %c0_13], %15 {strides = array<i32>} : memref<32x384xf32, #tpu.memory_space<vmem>>, vector<14x128xf32>,
    %c16_14 = arith.constant 16 : index
    %c128_15 = arith.constant 128 : index
    %17 = vector.load %arg9[%c16_14, %c128_15] : memref<32x384xf32, #tpu.memory_space<vmem>>, vector<16x128xf32>
    tpu.vector_store %arg9[%c16_14, %c128_15], %12 {strides = array<i32>} : memref<32x384xf32, #tpu.memory_space<vmem>>, vector<16x128xf32>,
    %cst_16 = arith.constant 0.000000e+00 : f32
    %18 = vector.broadcast %cst_16 : f32 to vector<2x128xf32>
    %c30 = arith.constant 30 : index
    %c256_17 = arith.constant 256 : index
    %19 = vector.load %arg9[%c30, %c256_17] : memref<32x384xf32, #tpu.memory_space<vmem>>, vector<2x128xf32>
    tpu.vector_store %arg9[%c30, %c256_17], %18 {strides = array<i32>} : memref<32x384xf32, #tpu.memory_space<vmem>>, vector<2x128xf32>,
    %20 = vector.extract_strided_slice %12 {offsets = [2, 0], sizes = [14, 128], strides = [1, 1]} : vector<16x128xf32> to vector<14x128xf32>
    %c16_18 = arith.constant 16 : index
    %c256_19 = arith.constant 256 : index
    %21 = vector.load %arg9[%c16_18, %c256_19] : memref<32x384xf32, #tpu.memory_space<vmem>>, vector<14x128xf32>
    tpu.vector_store %arg9[%c16_18, %c256_19], %20 {strides = array<i32>} : memref<32x384xf32, #tpu.memory_space<vmem>>, vector<14x128xf32>,
    %c0_20 = arith.constant 0 : index
    %c0_21 = arith.constant 0 : index
    %22 = vector.load %arg9[%c0_20, %c0_21] : memref<32x384xf32, #tpu.memory_space<vmem>>, vector<32x384xf32>
    %23 = arith.truncf %22 : vector<32x384xf32> to vector<32x384xbf16>
    %c0_22 = arith.constant 0 : index
    %c0_23 = arith.constant 0 : index
    %24 = vector.load %arg2[%c0_22, %c0_23] : memref<384x128xbf16, #tpu.memory_space<vmem>>, vector<384x128xbf16>
    %cst_24 = arith.constant dense<0.000000e+00> : vector<32x128xf32>
    %25 = tpu.matmul %23, %24, %cst_24 {dimension_numbers = #tpu.dot_dimension_numbers<[1], [0], [0], [1], [0, 0, 1, 1], [], []>} : vector<32x384xbf16>, vector<384x128xbf16>, vector<32x128xf32> -> vector<32x128xf32>
    %c0_25 = arith.constant 0 : index
    %c0_26 = arith.constant 0 : index
    %26 = vector.load %arg3[%c0_25, %c0_26] : memref<1x128xf32, #tpu.memory_space<vmem>>, vector<1x128xf32>
    %27 = vector.broadcast %26 : vector<1x128xf32> to vector<32x128xf32>
    %28 = arith.addf %25, %27 : vector<32x128xf32>
    %cst_27 = arith.constant 0.000000e+00 : f32
    %29 = vector.broadcast %cst_27 : f32 to vector<32x128xf32>
    %30 = arith.maximumf %28, %29 : vector<32x128xf32>
    %31 = vector.extract_strided_slice %30 {offsets = [0, 0], sizes = [16, 128], strides = [1, 1]} : vector<32x128xf32> to vector<16x128xf32>
    %cst_28 = arith.constant 0.000000e+00 : f32
    %32 = vector.broadcast %cst_28 : f32 to vector<2x128xf32>
    %c0_29 = arith.constant 0 : index
    %c0_30 = arith.constant 0 : index
    %33 = vector.load %arg10[%c0_29, %c0_30] : memref<32x384xf32, #tpu.memory_space<vmem>>, vector<2x128xf32>
    tpu.vector_store %arg10[%c0_29, %c0_30], %32 {strides = array<i32>} : memref<32x384xf32, #tpu.memory_space<vmem>>, vector<2x128xf32>,
    %34 = vector.extract_strided_slice %31 {offsets = [0, 0], sizes = [14, 128], strides = [1, 1]} : vector<16x128xf32> to vector<14x128xf32>
    %c2_31 = arith.constant 2 : index
    %c0_32 = arith.constant 0 : index
    %35 = vector.load %arg10[%c2_31, %c0_32] : memref<32x384xf32, #tpu.memory_space<vmem>>, vector<14x128xf32>
    tpu.vector_store %arg10[%c2_31, %c0_32], %34 {strides = array<i32>} : memref<32x384xf32, #tpu.memory_space<vmem>>, vector<14x128xf32>,
    %c0_33 = arith.constant 0 : index
    %c128_34 = arith.constant 128 : index
    %36 = vector.load %arg10[%c0_33, %c128_34] : memref<32x384xf32, #tpu.memory_space<vmem>>, vector<16x128xf32>
    tpu.vector_store %arg10[%c0_33, %c128_34], %31 {strides = array<i32>} : memref<32x384xf32, #tpu.memory_space<vmem>>, vector<16x128xf32>,
    %cst_35 = arith.constant 0.000000e+00 : f32
    %37 = vector.broadcast %cst_35 : f32 to vector<2x128xf32>
    %c14_36 = arith.constant 14 : index
    %c256_37 = arith.constant 256 : index
    %38 = vector.load %arg10[%c14_36, %c256_37] : memref<32x384xf32, #tpu.memory_space<vmem>>, vector<2x128xf32>
    tpu.vector_store %arg10[%c14_36, %c256_37], %37 {strides = array<i32>} : memref<32x384xf32, #tpu.memory_space<vmem>>, vector<2x128xf32>,
    %39 = vector.extract_strided_slice %31 {offsets = [2, 0], sizes = [14, 128], strides = [1, 1]} : vector<16x128xf32> to vector<14x128xf32>
    %c0_38 = arith.constant 0 : index
    %c256_39 = arith.constant 256 : index
    %40 = vector.load %arg10[%c0_38, %c256_39] : memref<32x384xf32, #tpu.memory_space<vmem>>, vector<14x128xf32>
    tpu.vector_store %arg10[%c0_38, %c256_39], %39 {strides = array<i32>} : memref<32x384xf32, #tpu.memory_space<vmem>>, vector<14x128xf32>,
    %41 = vector.extract_strided_slice %30 {offsets = [16, 0], sizes = [16, 128], strides = [1, 1]} : vector<32x128xf32> to vector<16x128xf32>
    %cst_40 = arith.constant 0.000000e+00 : f32
    %42 = vector.broadcast %cst_40 : f32 to vector<2x128xf32>
    %c16_41 = arith.constant 16 : index
    %c0_42 = arith.constant 0 : index
    %43 = vector.load %arg10[%c16_41, %c0_42] : memref<32x384xf32, #tpu.memory_space<vmem>>, vector<2x128xf32>
    tpu.vector_store %arg10[%c16_41, %c0_42], %42 {strides = array<i32>} : memref<32x384xf32, #tpu.memory_space<vmem>>, vector<2x128xf32>,
    %44 = vector.extract_strided_slice %41 {offsets = [0, 0], sizes = [14, 128], strides = [1, 1]} : vector<16x128xf32> to vector<14x128xf32>
    %c18_43 = arith.constant 18 : index
    %c0_44 = arith.constant 0 : index
    %45 = vector.load %arg10[%c18_43, %c0_44] : memref<32x384xf32, #tpu.memory_space<vmem>>, vector<14x128xf32>
    tpu.vector_store %arg10[%c18_43, %c0_44], %44 {strides = array<i32>} : memref<32x384xf32, #tpu.memory_space<vmem>>, vector<14x128xf32>,
    %c16_45 = arith.constant 16 : index
    %c128_46 = arith.constant 128 : index
    %46 = vector.load %arg10[%c16_45, %c128_46] : memref<32x384xf32, #tpu.memory_space<vmem>>, vector<16x128xf32>
    tpu.vector_store %arg10[%c16_45, %c128_46], %41 {strides = array<i32>} : memref<32x384xf32, #tpu.memory_space<vmem>>, vector<16x128xf32>,
    %cst_47 = arith.constant 0.000000e+00 : f32
    %47 = vector.broadcast %cst_47 : f32 to vector<2x128xf32>
    %c30_48 = arith.constant 30 : index
    %c256_49 = arith.constant 256 : index
    %48 = vector.load %arg10[%c30_48, %c256_49] : memref<32x384xf32, #tpu.memory_space<vmem>>, vector<2x128xf32>
    tpu.vector_store %arg10[%c30_48, %c256_49], %47 {strides = array<i32>} : memref<32x384xf32, #tpu.memory_space<vmem>>, vector<2x128xf32>,
    %49 = vector.extract_strided_slice %41 {offsets = [2, 0], sizes = [14, 128], strides = [1, 1]} : vector<16x128xf32> to vector<14x128xf32>
    %c16_50 = arith.constant 16 : index
    %c256_51 = arith.constant 256 : index
    %50 = vector.load %arg10[%c16_50, %c256_51] : memref<32x384xf32, #tpu.memory_space<vmem>>, vector<14x128xf32>
    tpu.vector_store %arg10[%c16_50, %c256_51], %49 {strides = array<i32>} : memref<32x384xf32, #tpu.memory_space<vmem>>, vector<14x128xf32>,
    %c0_52 = arith.constant 0 : index
    %c0_53 = arith.constant 0 : index
    %51 = vector.load %arg10[%c0_52, %c0_53] : memref<32x384xf32, #tpu.memory_space<vmem>>, vector<32x384xf32>
    %52 = arith.truncf %51 : vector<32x384xf32> to vector<32x384xbf16>
    %c0_54 = arith.constant 0 : index
    %c0_55 = arith.constant 0 : index
    %53 = vector.load %arg4[%c0_54, %c0_55] : memref<384x128xbf16, #tpu.memory_space<vmem>>, vector<384x128xbf16>
    %cst_56 = arith.constant dense<0.000000e+00> : vector<32x128xf32>
    %54 = tpu.matmul %52, %53, %cst_56 {dimension_numbers = #tpu.dot_dimension_numbers<[1], [0], [0], [1], [0, 0, 1, 1], [], []>} : vector<32x384xbf16>, vector<384x128xbf16>, vector<32x128xf32> -> vector<32x128xf32>
    %c0_57 = arith.constant 0 : index
    %c0_58 = arith.constant 0 : index
    %55 = vector.load %arg5[%c0_57, %c0_58] : memref<1x128xf32, #tpu.memory_space<vmem>>, vector<1x128xf32>
    %56 = vector.broadcast %55 : vector<1x128xf32> to vector<32x128xf32>
    %57 = arith.addf %54, %56 : vector<32x128xf32>
    %cst_59 = arith.constant 0.000000e+00 : f32
    %58 = vector.broadcast %cst_59 : f32 to vector<32x128xf32>
    %59 = arith.maximumf %57, %58 : vector<32x128xf32>
    %c0_60 = arith.constant 0 : index
    %c128_61 = arith.constant 128 : index
    %60 = vector.load %arg9[%c0_60, %c128_61] : memref<32x384xf32, #tpu.memory_space<vmem>>, vector<32x128xf32>
    %61 = arith.truncf %60 : vector<32x128xf32> to vector<32x128xbf16>
    %c0_62 = arith.constant 0 : index
    %c0_63 = arith.constant 0 : index
    %62 = vector.load %arg6[%c0_62, %c0_63] : memref<128x128xbf16, #tpu.memory_space<vmem>>, vector<128x128xbf16>
    %cst_64 = arith.constant dense<0.000000e+00> : vector<32x128xf32>
    %63 = tpu.matmul %61, %62, %cst_64 {dimension_numbers = #tpu.dot_dimension_numbers<[1], [0], [0], [1], [0, 0, 1, 1], [], []>} : vector<32x128xbf16>, vector<128x128xbf16>, vector<32x128xf32> -> vector<32x128xf32>
    %c0_65 = arith.constant 0 : index
    %c0_66 = arith.constant 0 : index
    %64 = vector.load %arg7[%c0_65, %c0_66] : memref<1x128xf32, #tpu.memory_space<vmem>>, vector<1x128xf32>
    %65 = vector.broadcast %64 : vector<1x128xf32> to vector<32x128xf32>
    %66 = arith.addf %63, %65 : vector<32x128xf32>
    %67 = vector.extract_strided_slice %66 {offsets = [0, 0], sizes = [16, 128], strides = [1, 1]} : vector<32x128xf32> to vector<16x128xf32>
    %68 = vector.extract_strided_slice %66 {offsets = [16, 0], sizes = [16, 128], strides = [1, 1]} : vector<32x128xf32> to vector<16x128xf32>
    %69 = vector.extract_strided_slice %59 {offsets = [0, 0], sizes = [16, 128], strides = [1, 1]} : vector<32x128xf32> to vector<16x128xf32>
    %70 = arith.addf %69, %67 : vector<16x128xf32>
    %cst_67 = arith.constant 0.000000e+00 : f32
    %71 = vector.broadcast %cst_67 : f32 to vector<16x128xf32>
    %72 = arith.maximumf %70, %71 : vector<16x128xf32>
    %c0_68 = arith.constant 0 : index
    %c0_69 = arith.constant 0 : index
    %c0_70 = arith.constant 0 : index
    %73 = vector.load %arg8[%c0_68, %c0_69, %c0_70] : memref<2x16x128xf32, #tpu.memory_space<vmem>>, vector<1x16x128xf32>
    %74 = vector.shape_cast %73 : vector<1x16x128xf32> to vector<16x128xf32>
    %75 = vector.shape_cast %72 : vector<16x128xf32> to vector<1x16x128xf32>
    tpu.vector_store %arg8[%c0_68, %c0_69, %c0_70], %75 {strides = array<i32>} : memref<2x16x128xf32, #tpu.memory_space<vmem>>, vector<1x16x128xf32>,
    %76 = vector.extract_strided_slice %59 {offsets = [16, 0], sizes = [16, 128], strides = [1, 1]} : vector<32x128xf32> to vector<16x128xf32>
    %77 = arith.addf %76, %68 : vector<16x128xf32>
    %cst_71 = arith.constant 0.000000e+00 : f32
    %78 = vector.broadcast %cst_71 : f32 to vector<16x128xf32>
    %79 = arith.maximumf %77, %78 : vector<16x128xf32>
    %c1_72 = arith.constant 1 : index
    %c0_73 = arith.constant 0 : index
    %c0_74 = arith.constant 0 : index
    %80 = vector.load %arg8[%c1_72, %c0_73, %c0_74] : memref<2x16x128xf32, #tpu.memory_space<vmem>>, vector<1x16x128xf32>
    %81 = vector.shape_cast %80 : vector<1x16x128xf32> to vector<16x128xf32>
    %82 = vector.shape_cast %79 : vector<16x128xf32> to vector<1x16x128xf32>
    tpu.vector_store %arg8[%c1_72, %c0_73, %c0_74], %82 {strides = array<i32>} : memref<2x16x128xf32, #tpu.memory_space<vmem>>, vector<1x16x128xf32>,
    return
  }
  func.func @transform_0(%arg0: i32) -> (i32, i32, i32) {
    %c0_i32 = arith.constant 0 : i32
    %c0_i32_0 = arith.constant 0 : i32
    %c0_i32_1 = arith.constant 0 : i32
    return %arg0, %c0_i32, %c0_i32_0 : i32, i32, i32
  }
  func.func @transform_1(%arg0: i32) -> (i32, i32) {
    %c0_i32 = arith.constant 0 : i32
    %c0_i32_0 = arith.constant 0 : i32
    %c0_i32_1 = arith.constant 0 : i32
    return %c0_i32, %c0_i32_0 : i32, i32
  }
  func.func @transform_2(%arg0: i32) -> (i32, i32) {
    %c0_i32 = arith.constant 0 : i32
    %c0_i32_0 = arith.constant 0 : i32
    %c0_i32_1 = arith.constant 0 : i32
    return %c0_i32, %c0_i32_0 : i32, i32
  }
  func.func @transform_3(%arg0: i32) -> (i32, i32) {
    %c0_i32 = arith.constant 0 : i32
    %c0_i32_0 = arith.constant 0 : i32
    %c0_i32_1 = arith.constant 0 : i32
    return %c0_i32, %c0_i32_0 : i32, i32
  }
  func.func @transform_4(%arg0: i32) -> (i32, i32) {
    %c0_i32 = arith.constant 0 : i32
    %c0_i32_0 = arith.constant 0 : i32
    %c0_i32_1 = arith.constant 0 : i32
    return %c0_i32, %c0_i32_0 : i32, i32
  }
  func.func @transform_5(%arg0: i32) -> (i32, i32) {
    %c0_i32 = arith.constant 0 : i32
    %c0_i32_0 = arith.constant 0 : i32
    %c0_i32_1 = arith.constant 0 : i32
    return %c0_i32, %c0_i32_0 : i32, i32
  }
  func.func @transform_6(%arg0: i32) -> (i32, i32) {
    %c0_i32 = arith.constant 0 : i32
    %c0_i32_0 = arith.constant 0 : i32
    %c0_i32_1 = arith.constant 0 : i32
    return %c0_i32, %c0_i32_0 : i32, i32
  }
  func.func @transform_7(%arg0: i32) -> (i32, i32, i32) {
    %c0_i32 = arith.constant 0 : i32
    %c0_i32_0 = arith.constant 0 : i32
    %c0_i32_1 = arith.constant 0 : i32
    return %arg0, %c0_i32, %c0_i32_0 : i32, i32, i32
  }
}

</mosaic_0001>

<bundles_post_ra>
// kernel: tpu_custom_call.1
= control target key start
LH: loop header
LB: loop body
LE: loop exit
PB: predicated region body
PF: predicated region fallthrough
CT: control target
= control target key end

     0   :  { %12 = vsyncpa [#allocation5], 0  ;;  %s1516_s0 = inlined_call_operand.hbm [shape: f32[2,16,128], index: 0, kind: input, shape index: {}]   ;;  %s1517_s1 = inlined_call_operand.hbm [shape: bf16[384,128], index: 1, kind: input, shape index: {}]   ;;  %s1518_s2 = inlined_call_operand.vmem [shape: f32[1,128], index: 2, kind: input, shape index: {}]   ;;  %s1519_s3 = inlined_call_operand.hbm [shape: bf16[384,128], index: 3, kind: input, shape index: {}]   ;;  %s1520_s4 = inlined_call_operand.vmem [shape: f32[1,128], index: 4, kind: input, shape index: {}]   ;;  %s1521_s5 = inlined_call_operand.hbm [shape: bf16[128,128], index: 5, kind: input, shape index: {}]   ;;  %s1522_s6 = inlined_call_operand.vmem [shape: f32[1,128], index: 6, kind: input, shape index: {}]   ;;  %s1523_s7 = inlined_call_operand.hbm [shape: f32[2,16,128], index: 7, kind: output, shape index: {}]  }
   0x1   :  { %13 = vsyncpa [#allocation8], 0 }
   0x2   :  { %14 = vsyncpa [#allocation11], 0 }
   0x3   :  { %15 = vsyncpa [#allocation6], 0  ;;  %s1355_s24 = smov [#allocation7]   ;;  %s1237_s28 = scalar_lea.hbm %s1517_s1, 3072 }
   0x4   :  { %s33_s25 = sshll.u32 %s1355_s24, 4  ;;  %p1238_p0 = scmp.ne.s32.totalorder %s1517_s1, %s1237_s28  ;;  %s34_s25 = int_to_ptr.vmem [resolvable:$true] %s33_s25 }
   0x5   :  { %p1241_p1 = scmp.lt.u32.totalorder %s1237_s28, %s1517_s1 }
   0x7   :  { %p1243_p2 = pnand %p1241_p1, %p1238_p0 }
   0x9   :  { %1246 = shalt.err (!%p1243_p2)
}
   0xa   :  { %s1247_s10 = scalar_lea.vmem %s34_s25, 3072  ;;  %p1252_p4 = scmp.lt.s32.totalorder %s34_s25, %s34_s25 }
   0xb   :  { %p1248_p3 = scmp.ne.s32.totalorder %s34_s25, %s1247_s10  ;;  %p1253_p5 = scmp.lt.s32.totalorder %s1247_s10, %s1247_s10 }
   0xd   :  { %p1254_p6 = por %p1253_p5, %p1252_p4 }
   0xf   :  { %p1255_p7 = pnand %p1254_p6, %p1248_p3 }
  0x11   :  { %1258 = shalt.err (!%p1255_p7)
}
  0x12   :  { %s1356_s11 = smov 64   ;;  %s1357_s12 = smov 4  }
  0x13   :  { %39 = dma.hbm_to_vmem [thread:$0]  %s1517_s1, 3072, %s34_s25, [#allocation8], %s1356_s11, %s1356_s11, %s1357_s12  }
  0x14   :  { %s1358_s15 = smov [#allocation4]   ;;  %s1259_s19 = scalar_lea.hbm %s1516_s0, 512 }
  0x15   :  { %s21_s16 = sshll.u32 %s1358_s15, 4  ;;  %p1260_p8 = scmp.ne.s32.totalorder %s1516_s0, %s1259_s19  ;;  %s22_s16 = int_to_ptr.vmem [resolvable:$true] %s21_s16 }
  0x16   :  { %p1263_p9 = scmp.lt.u32.totalorder %s1259_s19, %s1516_s0 }
  0x18   :  { %p1265_p10 = pnand %p1263_p9, %p1260_p8 }
  0x1a   :  { %1268 = shalt.err (!%p1265_p10)
}
  0x1b   :  { %s1269_s24 = scalar_lea.vmem %s22_s16, 512  ;;  %p1274_p12 = scmp.lt.s32.totalorder %s22_s16, %s22_s16 }
  0x1c   :  { %p1270_p11 = scmp.ne.s32.totalorder %s22_s16, %s1269_s24  ;;  %p1275_p13 = scmp.lt.s32.totalorder %s1269_s24, %s1269_s24 }
  0x1e   :  { %p1276_p0 = por %p1275_p13, %p1274_p12 }
  0x20   :  { %p1277_p1 = pnand %p1276_p0, %p1270_p11 }
  0x22   :  { %1280 = shalt.err (!%p1277_p1)
}
  0x23   :  { %s1359_s1 = smov 128   ;;  %s1360_s25 = smov 8  }
  0x24   :  { %27 = dma.hbm_to_vmem [thread:$0]  %s1516_s0, 512, %s22_s16, [#allocation5], %s1359_s1, %s1359_s1, %s1360_s25  }
  0x25   :  { %s1361_s28 = smov [#allocation9]   ;;  %s1362_s30 = smov [#allocation10]  }
  0x26   :  { %s47_s29 = sshll.u32 %s1361_s28, 4  ;;  %s61_s8 = sshll.u32 %s1362_s30, 4  ;;  %s48_s29 = int_to_ptr.vmem [resolvable:$true] %s47_s29  ;;  %s1435_s8 = int_to_ptr.vmem [resolvable:$true] %s61_s8 }
  0x27   :  { %s1281_s13 = scalar_lea.hbm %s1519_s3, 3072 }
  0x28   :  { %p1282_p2 = scmp.ne.s32.totalorder %s1519_s3, %s1281_s13  ;;  %p1285_p3 = scmp.lt.u32.totalorder %s1281_s13, %s1519_s3 }
  0x2a   :  { %p1287_p4 = pnand %p1285_p3, %p1282_p2 }
  0x2c   :  { %1290 = shalt.err (!%p1287_p4)
}
  0x2d   :  { %s1291_s0 = scalar_lea.vmem %s48_s29, 3072  ;;  %p1296_p6 = scmp.lt.s32.totalorder %s48_s29, %s48_s29 }
  0x2e   :  { %p1292_p5 = scmp.ne.s32.totalorder %s48_s29, %s1291_s0  ;;  %p1297_p7 = scmp.lt.s32.totalorder %s1291_s0, %s1291_s0 }
  0x30   :  { %p1298_p8 = por %p1297_p7, %p1296_p6 }
  0x32   :  { %p1299_p9 = pnand %p1298_p8, %p1292_p5 }
  0x34   :  { %1302 = shalt.err (!%p1299_p9)
}
  0x35   :  { %53 = dma.hbm_to_vmem [thread:$0]  %s1519_s3, 3072, %s48_s29, [#allocation8], %s1356_s11, %s1356_s11, %s1357_s12  }
  0x36   :  { %s1303_s22 = scalar_lea.hbm %s1521_s5, 1024 }
  0x37   :  { %p1304_p10 = scmp.ne.s32.totalorder %s1521_s5, %s1303_s22  ;;  %p1307_p11 = scmp.lt.u32.totalorder %s1303_s22, %s1521_s5 }
  0x39   :  { %p1309_p12 = pnand %p1307_p11, %p1304_p10 }
  0x3b   :  { %1312 = shalt.err (!%p1309_p12)
}
  0x3c   :  { %s1313_s28 = scalar_lea.vmem %s1435_s8, 1024  ;;  %p1318_p0 = scmp.lt.s32.totalorder %s1435_s8, %s1435_s8 }
  0x3d   :  { %p1314_p13 = scmp.ne.s32.totalorder %s1435_s8, %s1313_s28  ;;  %p1319_p1 = scmp.lt.s32.totalorder %s1313_s28, %s1313_s28 }
  0x3f   :  { %p1320_p2 = por %p1319_p1, %p1318_p0 }
  0x41   :  { %p1321_p3 = pnand %p1320_p2, %p1314_p13 }
  0x43   :  { %1324 = shalt.err (!%p1321_p3)
}
  0x44   :  { %67 = dma.hbm_to_vmem [thread:$0]  %s1521_s5, 1024, %s1435_s8, [#allocation11], %s1356_s11, %s1356_s11, %s1357_s12  }
  0x45   :  { %1347 = dma.done.wait [#allocation5], 512  }
  0x46   :  { %1348 = vsyncadd [#allocation5], 4294966784 }
  0x47   :  { %1349 = dma.done.wait [#allocation8], 6144  }
  0x48   :  { %1350 = vsyncadd [#allocation8], 4294961152 }
  0x49   :  { %1351 = dma.done.wait [#allocation11], 1024  }
  0x4a   :  { %1352 = vsyncadd [#allocation11], 4294966272  ;;  %v1363_v0 = vmov 0.0   ;;  %v1181_v1 = vld [vmem:[#allocation7 + $0x40] sm:$0xff]   ;;  %v1184_v4 = vld [vmem:[#allocation7 + $0x48] sm:$0xff]   ;;  %vm88_vm0 = vcmask 1041408  }
  0x4b   :  { %85 = vst [vmem:[#allocation2] sm:$0x3] %v1363_v0  ;;  %98 = vst [vmem:[#allocation2 + $0x28] sm:$0xc0] %v1363_v0  ;;  %v1182_v2 = vld [vmem:[#allocation7] sm:$0xff]   ;;  %1025 = vmatprep.subr.bf16.mxu0 %v1181_v1  ;;  %v1185_v5 = vld [vmem:[#allocation7 + $0x8] sm:$0xff]  }
  0x4c   :  { %110 = vst [vmem:[#allocation2 + $0x30] sm:$0x3] %v1363_v0  ;;  %122 = vst [vmem:[#allocation2 + $0x58] sm:$0xc0] %v1363_v0  ;;  %v1183_v3 = vld [vmem:[#allocation7 + $0x80] sm:$0xff]   ;;  %1026 = vmatpush3.bf16.msra.mxu0 %v1182_v2  ;;  %v1186_v6 = vld [vmem:[#allocation7 + $0x88] sm:$0xff]  }
  0x4d   :  { %449 = vst [vmem:[#allocation3] sm:$0x3] %v1363_v0  ;;  %461 = vst [vmem:[#allocation3 + $0x28] sm:$0xc0] %v1363_v0  ;;  %1111 = vmatprep.subr.bf16.mxu1 %v1183_v3  ;;  %1027 = vmatprep.subr.bf16.mxu0 %v1184_v4  ;;  %v1187_v7 = vld [vmem:[#allocation7 + $0x50] sm:$0xff]   ;;  %v1190_v10 = vld [vmem:[#allocation7 + $0x58] sm:$0xff]  }
  0x4e   :  { %469 = vst [vmem:[#allocation3 + $0x30] sm:$0x3] %v1363_v0  ;;  %481 = vst [vmem:[#allocation3 + $0x58] sm:$0xc0] %v1363_v0  ;;  %1112 = vmatpush3.bf16.msra.mxu1 %v1183_v3  ;;  %v1188_v8 = vld [vmem:[#allocation7 + $0x10] sm:$0xff]   ;;  %v1191_v11 = vld [vmem:[#allocation7 + $0x18] sm:$0xff]  }
  0x4f   :  { %1113 = vmatprep.subr.bf16.mxu1 %v1186_v6  ;;  %v1189_v9 = vld [vmem:[#allocation7 + $0x90] sm:$0xff]   ;;  %v1192_v12 = vld [vmem:[#allocation7 + $0x98] sm:$0xff]   ;;  %v1193_v13 = vld [vmem:[#allocation7 + $0x60] sm:$0xff]   ;;  %vm99_vm1 = vcmask 1045504   ;;  %s1364_s8 = smov [#allocation12]  }
  0x50   :  { %1028 = vmatpush3.bf16.msra.mxu0 %v1185_v5  ;;  %v1195_v14 = vld [vmem:[#allocation7 + $0xa0] sm:$0xff]   ;;  %v1196_v16 = vld [vmem:[#allocation7 + $0x68] sm:$0xff]   ;;  %v1199_v19 = vld [vmem:[#allocation7 + $0x70] sm:$0xff]   ;;  %s952_s9 = sshll.u32 %s1364_s8, 4  ;;  %s953_s9 = int_to_ptr.vmem [resolvable:$true] %s952_s9 }
  0x51   :  { %1029 = vmatprep.subr.bf16.mxu0 %v1187_v7  ;;  %v1194_v15 = vld [vmem:[#allocation7 + $0x20] sm:$0xff]   ;;  %v1198_v17 = vld [vmem:[#allocation7 + $0xa8] sm:$0xff]   ;;  %v1200_v20 = vld [vmem:[#allocation7 + $0x30] sm:$0xff]   ;;  %p1330_p5 = scmp.lt.s32.totalorder %s953_s9, %s953_s9 }
  0x52   :  { %1114 = vmatpush3.bf16.msra.mxu1 %v1186_v6  ;;  %v1197_v18 = vld [vmem:[#allocation7 + $0x28] sm:$0xff]   ;;  %v1201_v21 = vld [vmem:[#allocation7 + $0xb0] sm:$0xff]   ;;  %v1202_v22 = vld [vmem:[#allocation7 + $0x78] sm:$0xff]  }
  0x53   :  { %1115 = vmatprep.subr.bf16.mxu1 %v1189_v9  ;;  %v83_v23 = vld [vmem:[#allocation4] sm:$0xff]  ;;  %v84_v24 = vld [vmem:[#allocation4 + $0x8] sm:$0xff]  ;;  %v108_v25 = vld [vmem:[#allocation4 + $0x10] sm:$0xff] }
  0x54   :  { %1030 = vmatpush3.bf16.msra.mxu0 %v1188_v8  ;;  %v1203_v26 = vld [vmem:[#allocation7 + $0x38] sm:$0xff]   ;;  %v89_v27 = vrot.slane %v83_v23, 6  ;;  %v90_v28 = vrot.slane %v84_v24, 6  ;;  %v100_v29 = vrot.slane %v83_v23, 2  ;;  %v1472_v30 = vpack.c.bf16 %v84_v24, %v83_v23  ;;  %v1205_v41 = vld [vmem:[#allocation9 + $0x40] sm:$0xff]   ;;  %v1207_v46 = vld [vmem:[#allocation9 + $0x48] sm:$0xff]  }
  0x55   :  { %1031 = vmatprep.subr.bf16.mxu0 %v1190_v10  ;;  %v109_v31 = vld [vmem:[#allocation4 + $0x18] sm:$0xff]  ;;  %v101_v33 = vrot.slane %v84_v24, 2  ;;  %v123_v34 = vrot.slane %v108_v25, 2  ;;  %v113_v37 = vrot.slane %v108_v25, 6  ;;  %v1206_v43 = vld [vmem:[#allocation9] sm:$0xff]   ;;  %v1208_v53 = vld [vmem:[#allocation9 + $0x8] sm:$0xff]  }
  0x56   :  { %1116 = vmatpush3.bf16.msra.mxu1 %v1189_v9  ;;  %v1204_v32 = vld [vmem:[#allocation7 + $0xb8] sm:$0xff]   ;;  %v124_v35 = vrot.slane %v109_v31, 2  ;;  %379 = vmatprep.mubr.bf16.mxu0 %v1472_v30  ;;  %94 = vst [vmem:[#allocation2] sm:$0xfc] %v89_v27  ;;  %v91_v36 = vsel %vm88_vm0, %v89_v27, %v90_v28  ;;  %v114_v38 = vrot.slane %v109_v31, 6  ;;  %v1479_v45 = vpack.c.bf16 %v109_v31, %v108_v25  ;;  %v1209_v55 = vld [vmem:[#allocation9 + $0x50] sm:$0xff]  }
  0x57   :  { %1117 = vmatprep.subr.bf16.mxu1 %v1192_v12  ;;  %v102_v39 = vsel %vm99_vm1, %v100_v29, %v101_v33  ;;  %106 = vst [vmem:[#allocation2 + $0x28] sm:$0x3f] %v101_v33  ;;  %118 = vst [vmem:[#allocation2 + $0x30] sm:$0xfc] %v113_v37  ;;  %v1210_v56 = vld [vmem:[#allocation9 + $0x10] sm:$0xff]   ;;  %v1211_v57 = vld [vmem:[#allocation9 + $0x80] sm:$0xff]  }
  0x58   :  { %1032 = vmatpush3.bf16.msra.mxu0 %v1191_v11  ;;  %v125_v40 = vsel %vm99_vm1, %v123_v34, %v124_v35  ;;  %129 = vst [vmem:[#allocation2 + $0x58] sm:$0x3f] %v124_v35  ;;  %v115_v42 = vsel %vm88_vm0, %v113_v37, %v114_v38  ;;  %v1212_v58 = vld [vmem:[#allocation9 + $0x58] sm:$0xff]   ;;  %v1214_v60 = vld [vmem:[#allocation9 + $0x88] sm:$0xff]   ;;  %v1215_v61 = vld [vmem:[#allocation9 + $0x60] sm:$0xff]  }
  0x59   :  { %1033 = vmatprep.subr.bf16.mxu0 %v1193_v13  ;;  %v1213_v59 = vld [vmem:[#allocation9 + $0x18] sm:$0xff]   ;;  %v1216_v62 = vld [vmem:[#allocation9 + $0x20] sm:$0xff]   ;;  %v1217_v63 = vld [vmem:[#allocation9 + $0x90] sm:$0xff]  }
  0x5a   :  { %1118 = vmatpush3.bf16.msra.mxu1 %v1192_v12  ;;  %v1218_v0 = vld [vmem:[#allocation9 + $0x68] sm:$0xff]   ;;  %v1220_v2 = vld [vmem:[#allocation9 + $0x98] sm:$0xff]   ;;  %v1221_v3 = vld [vmem:[#allocation9 + $0x70] sm:$0xff]  }
  0x5b   :  { %1119 = vmatprep.subr.bf16.mxu1 %v1195_v14  ;;  %v1219_v1 = vld [vmem:[#allocation9 + $0x28] sm:$0xff]   ;;  %v1222_v4 = vld [vmem:[#allocation9 + $0x30] sm:$0xff]   ;;  %v1223_v5 = vld [vmem:[#allocation9 + $0xa0] sm:$0xff]  }
  0x5c   :  { %1034 = vmatpush3.bf16.msra.mxu0 %v1194_v15  ;;  %v1224_v6 = vld [vmem:[#allocation9 + $0x78] sm:$0xff]   ;;  %v1226_v8 = vld [vmem:[#allocation9 + $0xa8] sm:$0xff]   ;;  %v1482_v9 = vld [vmem:[#allocation10] sm:$0xff]  }
  0x5d   :  { %1035 = vmatprep.subr.bf16.mxu0 %v1196_v16  ;;  %v130_v44 = vld [vmem:[#allocation2] sm:$0xff]  ;;  %v1225_v7 = vld [vmem:[#allocation9 + $0x38] sm:$0xff]   ;;  %v1228_v10 = vld [vmem:[#allocation9 + $0xb0] sm:$0xff]  }
  0x5e   :  { %1120 = vmatpush3.bf16.msra.mxu1 %v1195_v14  ;;  %v142_v47 = vpack.c.bf16 %v91_v36, %v130_v44  ;;  %v135_v48 = vld [vmem:[#allocation2 + $0x28] sm:$0xff]  ;;  %v136_v52 = vld [vmem:[#allocation2 + $0x30] sm:$0xff]  ;;  %v1230_v11 = vld [vmem:[#allocation9 + $0xb8] sm:$0xff]  }
  0x5f   :  { %1121 = vmatprep.subr.bf16.mxu1 %v1198_v17  ;;  %v141_v49 = vld [vmem:[#allocation2 + $0x58] sm:$0xff]  ;;  %v144_v50 = vpack.c.bf16 %v135_v48, %v102_v39  ;;  %v145_v54 = vpack.c.bf16 %v115_v42, %v136_v52  ;;  %v966_v14 = vld [vmem:[%s1518_s2] ss:$0 sm:$0xff] }
  0x60   :  { %1036 = vmatpush3.bf16.msra.mxu0 %v1197_v18  ;;  %v147_v51 = vpack.c.bf16 %v141_v49, %v125_v40 }
  0x61   :  { %1037 = vmatprep.subr.bf16.mxu0 %v1199_v19  ;;  %1127 = vmatprep.mubr.bf16.mxu1 %v144_v50 }
  0x62   :  { %1122 = vmatpush3.bf16.msra.mxu1 %v1198_v17 }
  0x63   :  { %1123 = vmatprep.subr.bf16.mxu1 %v1201_v21 }
  0x64   :  { %1038 = vmatpush3.bf16.msra.mxu0 %v1200_v20 }
  0x65   :  { %1039 = vmatprep.subr.bf16.mxu0 %v1202_v22 }
  0x66   :  { %1124 = vmatpush3.bf16.msra.mxu1 %v1201_v21 }
  0x67   :  { %1125 = vmatprep.subr.bf16.mxu1 %v1204_v32 }
  0x68   :  { %1040 = vmatpush3.bf16.msra.mxu0 %v1203_v26 }
  0x69   :  { %1063 = vmatprep.subr.bf16.mxu0 %v1205_v41 }
  0x6a   :  { %1126 = vmatpush3.bf16.msra.mxu1 %v1204_v32 }
  0x6b   :  { %380 = vmatmul.mubr.bf16.vlgmr.msra.gmra.mrb[0].mxu0 %v142_v47  ;;  %1131 = vmatprep.subr.bf16.mxu1 %v1211_v57 }
  0x6c   :  { %387 = vmatprep.mubr.bf16.mxu0 %v1479_v45  ;;  %1064 = vmatpush3.bf16.msra.mxu0 %v1206_v43 }
  0x6d   :  { %1128 = vmatmul.mubr.bf16.vlgmr.msra.gmra.mrb[0].mxu1 %v147_v51  ;;  %1065 = vmatprep.subr.bf16.mxu0 %v1207_v46 }
  0x6e   :  { %1132 = vmatpush3.bf16.msra.mxu1 %v1211_v57 }
  0x6f   :  { %1133 = vmatprep.subr.bf16.mxu1 %v1214_v60 }
  0x70   :  { %1066 = vmatpush3.bf16.msra.mxu0 %v1208_v53 }
  0x71   :  { %1067 = vmatprep.subr.bf16.mxu0 %v1209_v55 }
  0x72   :  { %1134 = vmatpush3.bf16.msra.mxu1 %v1214_v60 }
  0x73   :  { %388 = vmatmul.mubr.bf16.gmra.mrb[4].mxu0 %v145_v54  ;;  %1135 = vmatprep.subr.bf16.mxu1 %v1217_v63 }
  0x74   :  { %1068 = vmatpush3.bf16.msra.mxu0 %v1210_v56  ;;  %v1229_v56 = vld [vmem:[#allocation10 + $0x8] sm:$0xff]  }
  0x75   :  { %1069 = vmatprep.subr.bf16.mxu0 %v1212_v58 }
  0x76   :  { %1136 = vmatpush3.bf16.msra.mxu1 %v1217_v63 }
  0x77   :  { %1137 = vmatprep.subr.bf16.mxu1 %v1220_v2 }
  0x78   :  { %1070 = vmatpush3.bf16.msra.mxu0 %v1213_v59 }
  0x79   :  { %1071 = vmatprep.subr.bf16.mxu0 %v1215_v61 }
  0x7a   :  { %1138 = vmatpush3.bf16.msra.mxu1 %v1220_v2 }
  0x7b   :  { %1139 = vmatprep.subr.bf16.mxu1 %v1223_v5 }
  0x7c   :  { %1072 = vmatpush3.bf16.msra.mxu0 %v1216_v62  ;;  %v1231_v62 = vld [vmem:[#allocation10 + $0x10] sm:$0xff]  }
  0x7d   :  { %1073 = vmatprep.subr.bf16.mxu0 %v1218_v0 }
  0x7e   :  { %1140 = vmatpush3.bf16.msra.mxu1 %v1223_v5  ;;  %v1234_v5 = vld [vmem:[#allocation10 + $0x28] sm:$0xff]  }
  0x7f   :  { %1141 = vmatprep.subr.bf16.mxu1 %v1226_v8 }
  0x80   :  { %1074 = vmatpush3.bf16.msra.mxu0 %v1219_v1  ;;  %v1232_v1 = vld [vmem:[#allocation10 + $0x18] sm:$0xff]  }
  0x81   :  { %1075 = vmatprep.subr.bf16.mxu0 %v1221_v3 }
  0x82   :  { %1142 = vmatpush3.bf16.msra.mxu1 %v1226_v8 }
  0x83   :  { %1143 = vmatprep.subr.bf16.mxu1 %v1228_v10 }
  0x84   :  { %1076 = vmatpush3.bf16.msra.mxu0 %v1222_v4  ;;  %v1233_v4 = vld [vmem:[#allocation10 + $0x20] sm:$0xff]  }
  0x85   :  { %1077 = vmatprep.subr.bf16.mxu0 %v1224_v6  ;;  %v1235_v6 = vld [vmem:[#allocation10 + $0x30] sm:$0xff]  }
  0x86   :  { %1144 = vmatpush3.bf16.msra.mxu1 %v1228_v10 }
  0x87   :  { %1145 = vmatprep.subr.bf16.mxu1 %v1230_v11 }
  0x88   :  { %1078 = vmatpush3.bf16.msra.mxu0 %v1225_v7  ;;  %v1236_v7 = vld [vmem:[#allocation10 + $0x38] sm:$0xff]  }
  0x89   :  { %1151 = vmatprep.subr.bf16.mxu0 %v1482_v9 }
  0x8a   :  { %1146 = vmatpush3.bf16.msra.mxu1 %v1230_v11 }
 0x13e   :  { %v1041_v12 = vpop.f32.mrb[0].mxu0 }
 0x13f   :  { %v1042_v13 = vpop.f32.mrb[1].mxu0 }
 0x140   :  { %v1043_v15 = vadd.f32 %v1042_v13, %v1041_v12  ;;  %v1129_v16 = vpop.f32.mrb[0].mxu1  ;;  %v1044_v17 = vpop.f32.mrb[2].mxu0  ;;  %v991_v13 = vld [vmem:[%s1520_s4] ss:$0 sm:$0xff] }
 0x141   :  { %v430_v18 = vpop.f32.mrb[1].mxu1  ;;  %v1045_v19 = vpop.f32.mrb[3].mxu0 }
 0x142   :  { %v382_v20 = vadd.f32 %v1043_v15, %v966_v14  ;;  %v1046_v21 = vadd.f32 %v1045_v19, %v1044_v17  ;;  %v1130_v22 = vpop.f32.mrb[2].mxu1 }
 0x143   :  { %v433_v23 = vpop.f32.mrb[3].mxu1 }
 0x144   :  { %v431_v24 = vadd.f32 %v430_v18, %v382_v20  ;;  %v385_v25 = vadd.f32 %v1046_v21, %v966_v14 }
 0x146   :  { %v445_v26 = vmax.f32 %v431_v24, 0.0  ;;  %v434_v27 = vadd.f32 %v433_v23, %v385_v25  ;;  %v1047_v28 = vpop.f32.mrb[4].mxu0 }
 0x147   :  { %v1048_v29 = vpop.f32.mrb[5].mxu0 }
 0x148   :  { %v452_v31 = vrot.slane %v445_v26, 6  ;;  %v446_v32 = vmax.f32 %v434_v27, 0.0  ;;  %v1049_v33 = vadd.f32 %v1048_v29, %v1047_v28  ;;  %v1050_v34 = vpop.f32.mrb[6].mxu0  ;;  %v462_v35 = vrot.slane %v445_v26, 2 }
 0x149   :  { %v1051_v36 = vpop.f32.mrb[7].mxu0 }
 0x14a   :  { %457 = vst [vmem:[#allocation3] sm:$0xfc] %v452_v31  ;;  %v453_v37 = vrot.slane %v446_v32, 6  ;;  %v463_v38 = vrot.slane %v446_v32, 2  ;;  %v390_v39 = vadd.f32 %v1049_v33, %v966_v14  ;;  %v1052_v40 = vadd.f32 %v1051_v36, %v1050_v34 }
 0x14b   :  { %v502_v41 = vpack.c.bf16 %v446_v32, %v445_v26  ;;  %v1016_v32 = vld [vmem:[%s1522_s6] ss:$0 sm:$0xff]  ;;  %s1325_s6 = scalar_lea.vmem %s953_s9, 512 }
 0x14c   :  { %v454_v42 = vsel %vm88_vm0, %v452_v31, %v453_v37  ;;  %v464_v43 = vsel %vm99_vm1, %v462_v35, %v463_v38  ;;  %468 = vst [vmem:[#allocation3 + $0x28] sm:$0x3f] %v463_v38  ;;  %v439_v44 = vadd.f32 %v1129_v16, %v390_v39  ;;  %v393_v46 = vadd.f32 %v1052_v40, %v966_v14  ;;  %p1326_p4 = scmp.ne.s32.totalorder %s953_s9, %s1325_s6  ;;  %p1331_p6 = scmp.lt.s32.totalorder %s1325_s6, %s1325_s6 }
 0x14d   :  { %738 = vmatprep.mubr.bf16.mxu0 %v502_v41 }
 0x14e   :  { %v447_v47 = vmax.f32 %v439_v44, 0.0  ;;  %v442_v48 = vadd.f32 %v1130_v22, %v393_v46  ;;  %p1332_p7 = por %p1331_p6, %p1330_p5 }
 0x150   :  { %v472_v49 = vrot.slane %v447_v47, 6  ;;  %v448_v50 = vmax.f32 %v442_v48, 0.0  ;;  %v482_v51 = vrot.slane %v447_v47, 2  ;;  %p1333_p8 = pnand %p1332_p7, %p1326_p4 }
 0x151   :  { %v489_v52 = vld [vmem:[#allocation3] sm:$0xff] }
 0x152   :  { %477 = vst [vmem:[#allocation3 + $0x30] sm:$0xfc] %v472_v49  ;;  %v473_v53 = vrot.slane %v448_v50, 6  ;;  %v483_v54 = vrot.slane %v448_v50, 2  ;;  %v501_v55 = vpack.c.bf16 %v454_v42, %v489_v52  ;;  %v505_v57 = vpack.c.bf16 %v448_v50, %v447_v47 }
 0x153   :  { %v494_v58 = vld [vmem:[#allocation3 + $0x28] sm:$0xff] }
 0x154   :  { %v474_v59 = vsel %vm88_vm0, %v472_v49, %v473_v53  ;;  %v484_v60 = vsel %vm99_vm1, %v482_v51, %v483_v54  ;;  %488 = vst [vmem:[#allocation3 + $0x58] sm:$0x3f] %v483_v54  ;;  %739 = vmatmul.mubr.bf16.vlgmr.msra.gmra.mrb[8].mxu0 %v501_v55  ;;  %v503_v61 = vpack.c.bf16 %v494_v58, %v464_v43 }
 0x155   :  { %1152 = vmatpush3.bf16.msra.mxu0 %v1482_v9  ;;  %746 = vmatprep.mubr.bf16.mxu0 %v505_v57 }
 0x156   :  { %1147 = vmatprep.mubr.bf16.mxu1 %v503_v61  ;;  %1153 = vmatprep.subr.bf16.mxu0 %v1229_v56 }
 0x159   :  { %1154 = vmatpush3.bf16.msra.mxu0 %v1229_v56  ;;  %v495_v63 = vld [vmem:[#allocation3 + $0x30] sm:$0xff] }
 0x15a   :  { %1155 = vmatprep.subr.bf16.mxu0 %v1231_v62  ;;  %v504_v0 = vpack.c.bf16 %v474_v59, %v495_v63 }
 0x15b   :  { %v500_v2 = vld [vmem:[#allocation3 + $0x58] sm:$0xff] }
 0x15c   :  { %747 = vmatmul.mubr.bf16.gmra.mrb[12].mxu0 %v504_v0  ;;  %v506_v3 = vpack.c.bf16 %v500_v2, %v484_v60 }
 0x15d   :  { %1156 = vmatpush3.bf16.msra.mxu0 %v1231_v62  ;;  %1167 = vmatprep.mubr.bf16.mxu0 %v1472_v30 }
 0x15e   :  { %1148 = vmatmul.mubr.bf16.vlgmr.msra.gmra.mrb[4].mxu1 %v506_v3  ;;  %1157 = vmatprep.subr.bf16.mxu0 %v1232_v1 }
 0x161   :  { %1158 = vmatpush3.bf16.msra.mxu0 %v1232_v1 }
 0x162   :  { %1159 = vmatprep.subr.bf16.mxu0 %v1233_v4 }
 0x165   :  { %1160 = vmatpush3.bf16.msra.mxu0 %v1233_v4 }
 0x166   :  { %1161 = vmatprep.subr.bf16.mxu0 %v1234_v5 }
 0x169   :  { %1162 = vmatpush3.bf16.msra.mxu0 %v1234_v5 }
 0x16a   :  { %1163 = vmatprep.subr.bf16.mxu0 %v1235_v6 }
 0x16d   :  { %1164 = vmatpush3.bf16.msra.mxu0 %v1235_v6 }
 0x16e   :  { %1165 = vmatprep.subr.bf16.mxu0 %v1236_v7 }
 0x171   :  { %1166 = vmatpush3.bf16.msra.mxu0 %v1236_v7 }
 0x174   :  { %1168 = vmatmul.mubr.bf16.vlgmr.msra.gmra.mrb[16].mxu0 %v1479_v45 }
 0x227   :  { %v1079_v8 = vpop.f32.mrb[8].mxu0 }
 0x228   :  { %v1080_v9 = vpop.f32.mrb[9].mxu0 }
 0x229   :  { %v1081_v30 = vadd.f32 %v1080_v9, %v1079_v8  ;;  %v1082_v10 = vpop.f32.mrb[10].mxu0 }
 0x22a   :  { %v1083_v11 = vpop.f32.mrb[11].mxu0 }
 0x22b   :  { %v1084_v12 = vadd.f32 %v1083_v11, %v1082_v10  ;;  %v741_v18 = vadd.f32 %v1081_v30, %v991_v13 }
 0x22d   :  { %v744_v25 = vadd.f32 %v1084_v12, %v991_v13 }
 0x22f   :  { %v1085_v14 = vpop.f32.mrb[12].mxu0 }
 0x230   :  { %v1086_v15 = vpop.f32.mrb[13].mxu0 }
 0x231   :  { %v1149_v16 = vpop.f32.mrb[4].mxu1  ;;  %v1087_v17 = vadd.f32 %v1086_v15, %v1085_v14  ;;  %v1088_v19 = vpop.f32.mrb[14].mxu0 }
 0x232   :  { %v789_v20 = vpop.f32.mrb[5].mxu1  ;;  %v1089_v21 = vpop.f32.mrb[15].mxu0 }
 0x233   :  { %v749_v22 = vadd.f32 %v1087_v17, %v991_v13  ;;  %v790_v45 = vadd.f32 %v789_v20, %v741_v18  ;;  %v1150_v23 = vpop.f32.mrb[6].mxu1  ;;  %v1090_v24 = vadd.f32 %v1089_v21, %v1088_v19 }
 0x234   :  { %v792_v26 = vpop.f32.mrb[7].mxu1 }
 0x235   :  { %v798_v27 = vadd.f32 %v1149_v16, %v749_v22  ;;  %v752_v28 = vadd.f32 %v1090_v24, %v991_v13  ;;  %v793_v29 = vadd.f32 %v792_v26, %v744_v25  ;;  %v804_v37 = vmax.f32 %v790_v45, 0.0 }
 0x237   :  { %v801_v31 = vadd.f32 %v1150_v23, %v752_v28  ;;  %v806_v34 = vmax.f32 %v798_v27, 0.0  ;;  %v805_v44 = vmax.f32 %v793_v29, 0.0 }
 0x239   :  { %v807_v41 = vmax.f32 %v801_v31, 0.0 }
 0x247   :  { %v1169_v33 = vpop.f32.mrb[16].mxu0 }
 0x248   :  { %v928_v35 = vadd.f32 %v1169_v33, %v1016_v32  ;;  %v919_v36 = vpop.f32.mrb[17].mxu0 }
 0x249   :  { %v920_v38 = vadd.f32 %v1016_v32, %v919_v36  ;;  %v1170_v39 = vpop.f32.mrb[18].mxu0 }
 0x24a   :  { %v940_v40 = vadd.f32 %v928_v35, %v806_v34  ;;  %v931_v42 = vadd.f32 %v1170_v39, %v1016_v32  ;;  %v922_v43 = vpop.f32.mrb[19].mxu0 }
 0x24b   :  { %v934_v46 = vadd.f32 %v920_v38, %v804_v37  ;;  %v923_v47 = vadd.f32 %v1016_v32, %v922_v43 }
 0x24c   :  { %v942_v48 = vmax.f32 %v940_v40, 0.0  ;;  %v941_v49 = vadd.f32 %v931_v42, %v807_v41 }
 0x24d   :  { %v936_v50 = vmax.f32 %v934_v46, 0.0  ;;  %v935_v51 = vadd.f32 %v923_v47, %v805_v44 }
 0x24e   :  { %945 = vst [vmem:[#allocation12 + $0x10] sm:$0xff] %v942_v48  ;;  %v943_v52 = vmax.f32 %v941_v49, 0.0 }
 0x24f   :  { %938 = vst [vmem:[#allocation12] sm:$0xff] %v936_v50  ;;  %v937_v53 = vmax.f32 %v935_v51, 0.0 }
 0x250   :  { %946 = vst [vmem:[#allocation12 + $0x18] sm:$0xff] %v943_v52 }
 0x251   :  { %939 = vst [vmem:[#allocation12 + $0x8] sm:$0xff] %v937_v53 }
 0x252   :  { %1336 = shalt.err (!%p1333_p8)
}
 0x253   :  { %s1337_s14 = scalar_lea.hbm %s1523_s7, 512 }
 0x254   :  { %p1338_p9 = scmp.ne.s32.totalorder %s1523_s7, %s1337_s14  ;;  %p1341_p10 = scmp.lt.u32.totalorder %s1337_s14, %s1523_s7 }
 0x256   :  { %p1343_p11 = pnand %p1341_p10, %p1338_p9 }
 0x258   :  { %1346 = shalt.err (!%p1343_p11)
}
 0x259   :  { %958 = dma.vmem_to_hbm [thread:$0]  %s953_s9, 512, %s1523_s7, [#allocation6], %s1359_s1, %s1359_s1, %s1360_s25  }
 0x25a   :  { %1353 = dma.done.wait [#allocation6], 512  }
 0x25b   :  { %1354 = vsyncadd [#allocation6], 4294966784 }
 0x25c   :  { %962 = vsyncpa [#allocation5], 1 }
 0x25d   :  { %963 = vsyncpa [#allocation8], 1 }
 0x25e   :  { %964 = vsyncpa [#allocation11], 1 }
 0x25f   :  { %965 = vsyncpa [#allocation6], 1 }

</bundles_post_ra>
